<compile_context>
chip_gen: v6e
topology: v6e:2x2x1
jax: 0.10.0
libtpu: 0.0.40
codegen_flags: <defaults>
</compile_context>

<pallas_src>
import jax
import jax.numpy as jnp
from jax.experimental import pallas as pl

# ----------------------------- configuration -----------------------------
B = 2          # batch
L = 8          # sequence length (CONFIG['max_length'] scaled down)
H = 32         # hidden size (deberta-v3-base hidden_size scaled down)
C = 3          # CONFIG['num_classes']
C_PAD = 128    # lane-dense padded output width (sliced back to C outside)
V = 64         # vocab size (synthetic)


# --------------- fused backbone-dense + mean-pool + fc kernel --------------
def fused_kernel(x_ref, w1_ref, b1_ref, pool_ref, fcw_ref, fcb_ref, o_ref):
    # x_ref:    (B*L, H)    token embeddings
    # w1_ref:   (H, H)      synthetic backbone dense weight
    # b1_ref:   (1, H)      synthetic backbone dense bias
    # pool_ref: (B, B*L)    block-diagonal attention-mask matrix
    # fcw_ref:  (H, C_PAD)  zero-padded fc weight
    # fcb_ref:  (1, C_PAD)  zero-padded fc bias
    # o_ref:    (B, C_PAD)  padded logits

    # synthetic backbone: last_hidden_state = tanh(x @ W1 + b1)   (B*L, H)
    h = jnp.tanh(
        jnp.dot(x_ref[...], w1_ref[...], preferred_element_type=jnp.float32)
        + b1_ref[...])

    # MeanPooling via MXU: sum_emb[b] = sum_l mask[b, l] * h[b*L + l]
    pool = pool_ref[...]                                              # (B, B*L)
    sum_emb = jnp.dot(pool, h, preferred_element_type=jnp.float32)    # (B, H)
    sum_mask = jnp.sum(pool, axis=1, keepdims=True)                   # (B, 1)
    sum_mask = jnp.maximum(sum_mask, 1e-9)      # torch.clamp(min=1e-9)
    pooled = sum_emb / sum_mask                                       # (B, H)

    # Dropout(p=0.2) is identity in eval mode.
    # fc head: lane-dense (B, C_PAD) unmasked store.
    o_ref[...] = (jnp.dot(pooled, fcw_ref[...],
                          preferred_element_type=jnp.float32)
                  + fcb_ref[...])


def feedback_forward_fused(x, w1, b1, pool_mat, fc_w_pad, fc_b_pad):
    # Single grid step; whole-array VMEM blocks (everything fits easily).
    out_pad = pl.pallas_call(
        fused_kernel,
        out_shape=jax.ShapeDtypeStruct((B, C_PAD), jnp.float32),
    )(x, w1, b1, pool_mat, fc_w_pad, fc_b_pad)
    return out_pad[:, :C]                                             # (B, C)


# ----------------------------- model wrapper ------------------------------
def init_params(seed=2022):
    key = jax.random.PRNGKey(seed)
    k_emb, k_w1, k_fcw = jax.random.split(key, 3)
    fc_w = 0.05 * jax.random.normal(k_fcw, (H, C), jnp.float32)
    params = {
        # synthetic backbone (stands in for AutoModel.from_pretrained)
        "emb": 0.02 * jax.random.normal(k_emb, (V, H), jnp.float32),
        "w1": 0.05 * jax.random.normal(k_w1, (H, H), jnp.float32),
        "b1": jnp.zeros((1, H), jnp.float32),
        # fc = nn.Linear(hidden_size, num_classes), zero-padded to lane width
        "fc_w": jnp.pad(fc_w, ((0, 0), (0, C_PAD - C))),              # (H, 128)
        "fc_b": jnp.zeros((1, C_PAD), jnp.float32),                   # (1, 128)
    }
    return params


def feedback_model_forward(params, ids, mask):
    # Embedding lookup (gather) stays outside the kernel.
    # TODO(synk): real DeBERTa-v3 encoder (attention stack) not reproduced;
    # replaced by embedding + one dense+tanh layer fused into the kernel.
    emb = jnp.take(params["emb"], ids, axis=0)                        # (B, L, H)
    x = emb.reshape(B * L, H)

    # block-diagonal pooling matrix: pool_mat[b, b*L + l] = mask[b, l]
    mask_f = mask.astype(jnp.float32)
    pool_mat = (jnp.eye(B, dtype=jnp.float32)[:, :, None]
                * mask_f[None, :, :]).reshape(B, B * L)               # (B, B*L)

    logits = feedback_forward_fused(x, params["w1"], params["b1"],
                                    pool_mat, params["fc_w"], params["fc_b"])
    return logits                                                     # (B, C)


# --------------------------------- main ------------------------------------
if __name__ == "__main__":
    key = jax.random.PRNGKey(0)
    k_ids, _ = jax.random.split(key)
    ids = jax.random.randint(k_ids, (B, L), 0, V, dtype=jnp.int32)
    # attention mask: batch 0 fully valid, batch 1 has last 3 tokens padded
    mask = jnp.array(
        [[1] * L,
         [1] * (L - 3) + [0] * 3],
        dtype=jnp.int32,
    )

    params = init_params()
    out = feedback_model_forward(params, ids, mask)
    out = jax.block_until_ready(out)
    assert out.shape == (B, C) and out.dtype == jnp.float32
    print("KERNEL_OK")
</pallas_src>

<mosaic_0001>
module attributes {stable_mosaic.version = 11 : i64} {
  func.func @fused_kernel(%arg0: memref<16x32xf32, #tpu.memory_space<vmem>>, %arg1: memref<32x32xf32, #tpu.memory_space<vmem>>, %arg2: memref<1x32xf32, #tpu.memory_space<vmem>>, %arg3: memref<2x16xf32, #tpu.memory_space<vmem>>, %arg4: memref<32x128xf32, #tpu.memory_space<vmem>>, %arg5: memref<1x128xf32, #tpu.memory_space<vmem>>, %arg6: memref<2x128xf32, #tpu.memory_space<vmem>>) attributes {dimension_semantics = [], scalar_prefetch = 0 : i64, scratch_operands = 0 : i64, tpu.core_type = #tpu.core_type<tc>} {
    %c0 = arith.constant 0 : index
    %c0_0 = arith.constant 0 : index
    %0 = vector.load %arg0[%c0, %c0_0] : memref<16x32xf32, #tpu.memory_space<vmem>>, vector<16x32xf32>
    %c0_1 = arith.constant 0 : index
    %c0_2 = arith.constant 0 : index
    %1 = vector.load %arg1[%c0_1, %c0_2] : memref<32x32xf32, #tpu.memory_space<vmem>>, vector<32x32xf32>
    %cst = arith.constant dense<0.000000e+00> : vector<16x32xf32>
    %2 = tpu.matmul %0, %1, %cst {dimension_numbers = #tpu.dot_dimension_numbers<[1], [0], [0], [1], [0, 0, 1, 1], [], []>} : vector<16x32xf32>, vector<32x32xf32>, vector<16x32xf32> -> vector<16x32xf32>
    %c0_3 = arith.constant 0 : index
    %c0_4 = arith.constant 0 : index
    %3 = vector.load %arg2[%c0_3, %c0_4] : memref<1x32xf32, #tpu.memory_space<vmem>>, vector<1x32xf32>
    %4 = vector.broadcast %3 : vector<1x32xf32> to vector<16x32xf32>
    %5 = arith.addf %2, %4 : vector<16x32xf32>
    %6 = math.tanh %5 : vector<16x32xf32>
    %c0_5 = arith.constant 0 : index
    %c0_6 = arith.constant 0 : index
    %7 = vector.load %arg3[%c0_5, %c0_6] : memref<2x16xf32, #tpu.memory_space<vmem>>, vector<2x16xf32>
    %cst_7 = arith.constant dense<0.000000e+00> : vector<2x32xf32>
    %8 = tpu.matmul %7, %6, %cst_7 {dimension_numbers = #tpu.dot_dimension_numbers<[1], [0], [0], [1], [0, 0, 1, 1], [], []>} : vector<2x16xf32>, vector<16x32xf32>, vector<2x32xf32> -> vector<2x32xf32>
    %cst_8 = arith.constant dense<0.000000e+00> : vector<2xf32>
    %9 = vector.multi_reduction <add>, %7, %cst_8 [1] : vector<2x16xf32> to vector<2xf32>
    %10 = vector.shape_cast %9 : vector<2xf32> to vector<2x1xf32>
    %cst_9 = arith.constant 9.99999971E-10 : f32
    %11 = vector.broadcast %cst_9 : f32 to vector<2x1xf32>
    %12 = arith.maximumf %10, %11 : vector<2x1xf32>
    %13 = vector.broadcast %12 : vector<2x1xf32> to vector<2x32xf32>
    %14 = arith.divf %8, %13 : vector<2x32xf32>
    %c0_10 = arith.constant 0 : index
    %c0_11 = arith.constant 0 : index
    %15 = vector.load %arg4[%c0_10, %c0_11] : memref<32x128xf32, #tpu.memory_space<vmem>>, vector<32x128xf32>
    %cst_12 = arith.constant dense<0.000000e+00> : vector<2x128xf32>
    %16 = tpu.matmul %14, %15, %cst_12 {dimension_numbers = #tpu.dot_dimension_numbers<[1], [0], [0], [1], [0, 0, 1, 1], [], []>} : vector<2x32xf32>, vector<32x128xf32>, vector<2x128xf32> -> vector<2x128xf32>
    %c0_13 = arith.constant 0 : index
    %c0_14 = arith.constant 0 : index
    %17 = vector.load %arg5[%c0_13, %c0_14] : memref<1x128xf32, #tpu.memory_space<vmem>>, vector<1x128xf32>
    %18 = vector.broadcast %17 : vector<1x128xf32> to vector<2x128xf32>
    %19 = arith.addf %16, %18 : vector<2x128xf32>
    %c0_15 = arith.constant 0 : index
    %c0_16 = arith.constant 0 : index
    %20 = vector.load %arg6[%c0_15, %c0_16] : memref<2x128xf32, #tpu.memory_space<vmem>>, vector<2x128xf32>
    tpu.vector_store %arg6[%c0_15, %c0_16], %19 {strides = array<i32>} : memref<2x128xf32, #tpu.memory_space<vmem>>, vector<2x128xf32>,
    return
  }
}

</mosaic_0001>

<bundles_post_ra>
// kernel: tpu_custom_call.1
= control target key start
LH: loop header
LB: loop body
LE: loop exit
PB: predicated region body
PF: predicated region fallthrough
CT: control target
= control target key end

     0   :  { %11 = vsyncpa [#allocation3], 0  ;;  %s563_s0 = inlined_call_operand.hbm [shape: f32[16,32], index: 0, kind: input, shape index: {}]   ;;  %s564_s1 = inlined_call_operand.hbm [shape: f32[32,32], index: 1, kind: input, shape index: {}]   ;;  %s565_s2 = inlined_call_operand.vmem [shape: f32[1,32], index: 2, kind: input, shape index: {}]   ;;  %s566_s3 = inlined_call_operand.vmem [shape: f32[2,16], index: 3, kind: input, shape index: {}]   ;;  %s567_s4 = inlined_call_operand.hbm [shape: f32[32,128], index: 4, kind: input, shape index: {}]   ;;  %s568_s5 = inlined_call_operand.vmem [shape: f32[1,128], index: 5, kind: input, shape index: {}]   ;;  %s569_s6 = inlined_call_operand.hbm [shape: f32[2,128], index: 6, kind: output, shape index: {}]  }
   0x1   :  { %12 = vsyncpa [#allocation6], 0 }
   0x2   :  { %13 = vsyncpa [#allocation4], 0  ;;  %s494_s21 = smov [#allocation5]   ;;  %s495_s23 = smov [#allocation2]  }
   0x3   :  { %s31_s22 = sshll.u32 %s494_s21, 4  ;;  %s19_s24 = sshll.u32 %s495_s23, 4  ;;  %s32_s22 = int_to_ptr.vmem [resolvable:$true] %s31_s22  ;;  %s20_s24 = int_to_ptr.vmem [resolvable:$true] %s19_s24 }
   0x4   :  { %s416_s25 = scalar_lea.vmem %s32_s22, 512  ;;  %p421_p1 = scmp.lt.s32.totalorder %s32_s22, %s32_s22 }
   0x5   :  { %p417_p0 = scmp.ne.s32.totalorder %s32_s22, %s416_s25  ;;  %p422_p2 = scmp.lt.s32.totalorder %s416_s25, %s416_s25 }
   0x7   :  { %p423_p3 = por %p422_p2, %p421_p1 }
   0x9   :  { %p424_p4 = pnand %p423_p3, %p417_p0 }
   0xb   :  { %427 = shalt.err (!%p424_p4)
}
   0xc   :  { %s496_s26 = smov 128   ;;  %s497_s27 = smov 8  }
   0xd   :  { %37 = dma.hbm_to_vmem [thread:$0]  %s564_s1, 512, %s32_s22, [#allocation6], %s496_s26, %s496_s26, %s497_s27  }
   0xe   :  { %s436_s30 = scalar_lea.vmem %s20_s24, 256  ;;  %p441_p6 = scmp.lt.s32.totalorder %s20_s24, %s20_s24 }
   0xf   :  { %p437_p5 = scmp.ne.s32.totalorder %s20_s24, %s436_s30  ;;  %p442_p7 = scmp.lt.s32.totalorder %s436_s30, %s436_s30 }
  0x11   :  { %p443_p8 = por %p442_p7, %p441_p6 }
  0x13   :  { %p444_p9 = pnand %p443_p8, %p437_p5 }
  0x15   :  { %447 = shalt.err (!%p444_p9)
}
  0x16   :  { %25 = dma.hbm_to_vmem [thread:$0]  %s563_s0, 256, %s20_s24, [#allocation3], %s496_s26, %s496_s26, %s497_s27  }
  0x17   :  { %s498_s9 = smov [#allocation7]  }
  0x18   :  { %s47_s10 = sshll.u32 %s498_s9, 4  ;;  %s48_s10 = int_to_ptr.vmem [resolvable:$true] %s47_s10 }
  0x19   :  { %s456_s11 = scalar_lea.vmem %s48_s10, 512  ;;  %p461_p11 = scmp.lt.s32.totalorder %s48_s10, %s48_s10 }
  0x1a   :  { %p457_p10 = scmp.ne.s32.totalorder %s48_s10, %s456_s11  ;;  %p462_p12 = scmp.lt.s32.totalorder %s456_s11, %s456_s11 }
  0x1c   :  { %p463_p13 = por %p462_p12, %p461_p11 }
  0x1e   :  { %p464_p0 = pnand %p463_p13, %p457_p10 }
  0x20   :  { %467 = shalt.err (!%p464_p0)
}
  0x21   :  { %53 = dma.hbm_to_vmem [thread:$0]  %s567_s4, 512, %s48_s10, [#allocation6], %s496_s26, %s496_s26, %s497_s27  }
  0x22   :  { %488 = dma.done.wait [#allocation3], 256  }
  0x23   :  { %489 = vsyncadd [#allocation3], 4294967040 }
  0x24   :  { %490 = dma.done.wait [#allocation6], 1024  }
  0x25   :  { %491 = vsyncadd [#allocation6], 4294966272  ;;  %vm78_vm0 = vcmask 261120   ;;  %v70_v0 = vld [vmem:[#allocation5 + $0x18] sm:$0xff]  ;;  %v69_v1 = vld [vmem:[#allocation5 + $0x10] sm:$0xff]  ;;  %v499_v6 = vmov 0.0  }
  0x26   :  { %365 = vmatprep.subr.mxu0 %v70_v0  ;;  %v65_v2 = vld [vmem:[#allocation2] sm:$0xff]  ;;  %v68_v3 = vld [vmem:[#allocation5 + $0x8] sm:$0xff]  ;;  %v67_v4 = vld [vmem:[#allocation5] sm:$0xff]  ;;  %376 = vmatprep.subr.mxu1 %v499_v6  ;;  %vm500_vm1 = vmmov 0   ;;  %vm237_vm2 = vcmask 123904   ;;  %vm163_vm3 = vcmask 130048  }
  0x27   :  { %366 = vmatpush3.msra.mxu0 %v70_v0  ;;  %373 = vmatprep.mubr.msk.f32.mxu0 %vm78_vm0, %v65_v2  ;;  %v66_v5 = vld [vmem:[#allocation2 + $0x8] sm:$0xff]  ;;  %v162_v7 = vld [vmem:[%s566_s3] sm:$0x3]  ;;  %v245_v18 = vld [vmem:[#allocation7 + $0x8] sm:$0xff]  ;;  %s501_s15 = smov [#allocation8]  }
  0x28   :  { %367 = vmatprep.subr.mxu0 %v69_v1  ;;  %380 = vmatprep.mubr.msk.f32.mxu1 %vm500_vm1, %v499_v6  ;;  %v238_v8 = vsel %vm237_vm2, %v162_v7, 0.0  ;;  %v345_v9 = vld [vmem:[%s565_s2] ss:$0 sm:$0xff]  ;;  %v247_v16 = vld [vmem:[#allocation7 + $0x18] sm:$0xff]  ;;  %v244_v19 = vld [vmem:[#allocation7] sm:$0xff]  ;;  %s335_s16 = sshll.u32 %s501_s15, 4  ;;  %s336_s16 = int_to_ptr.vmem [resolvable:$true] %s335_s16 }
  0x29   :  { %368 = vmatpush3.msra.mxu0 %v69_v1  ;;  %239 = vadd.xlane.f32.xlu0 %v238_v8  ;;  %v246_v17 = vld [vmem:[#allocation7 + $0x10] sm:$0xff]  ;;  %s468_s17 = scalar_lea.vmem %s336_s16, 32  ;;  %p473_p2 = scmp.lt.s32.totalorder %s336_s16, %s336_s16 }
  0x2a   :  { %369 = vmatprep.subr.mxu0 %v68_v3  ;;  %v349_v26 = vld [vmem:[%s568_s5] ss:$0 sm:$0xff]  ;;  %p469_p1 = scmp.ne.s32.totalorder %s336_s16, %s468_s17  ;;  %p474_p3 = scmp.lt.s32.totalorder %s468_s17, %s468_s17 }
  0x2b   :  { %370 = vmatpush3.msra.mxu0 %v68_v3 }
  0x2c   :  { %371 = vmatprep.subr.mxu0 %v67_v4  ;;  %p475_p4 = por %p474_p3, %p473_p2 }
  0x2d   :  { %372 = vmatpush3.msra.mxu0 %v67_v4 }
  0x2e   :  { %374 = vmatmul.mubr.msk.f32.vlgmr.msra.gmra.mxu0 %vm78_vm0, %v66_v5  ;;  %p476_p5 = pnand %p475_p4, %p469_p1 }
  0xb2   :  { %v240_v20 = vpop.xlane.xlu0 %239 }
  0xb3   :  { %v241_v21 = vmax.f32 %v240_v20, 1e-09 }
  0xee   :  { %v375_v10 = vpop.f32.mrf.mxu0 }
  0xef   :  { %v157_v11 = vadd.f32 %v375_v10, %v345_v9 }
  0xf0   :  { %v151_v12 = vpop.f32.mrf.mxu0 }
  0xf1   :  { %402 = vtanh.f32 %v157_v11  ;;  %v152_v13 = vadd.f32 %v345_v9, %v151_v12 }
  0xf3   :  { %404 = vtanh.f32 %v152_v13 }
  0xf4   :  { %406 = vrcp.f32 %v241_v21 }
  0xfe   :  { %v403_v14 = vpop.eup %402 }
  0xff   :  { %377 = vmatpush3.msra.mxu1 %v403_v14 }
 0x100   :  { %v405_v15 = vpop.eup %404  ;;  %378 = vmatprep.subr.mxu1 %v499_v6 }
 0x101   :  { %379 = vmatpush3.msra.mxu1 %v405_v15  ;;  %v407_v22 = vpop.eup %406 }
 0x102   :  { %381 = vmatmul.mubr.msk.f32.vlgmr.msra.gmra.mxu1 %vm163_vm3, %v162_v7  ;;  %383 = vmatprep.subr.mxu1 %v499_v6 }
 0x103   :  { %384 = vmatpush3.msra.mxu1 %v247_v16  ;;  %391 = vmatprep.mubr.msk.f32.mxu1 %vm500_vm1, %v499_v6 }
 0x104   :  { %385 = vmatprep.subr.mxu1 %v499_v6 }
 0x105   :  { %386 = vmatpush3.msra.mxu1 %v246_v17 }
 0x106   :  { %387 = vmatprep.subr.mxu1 %v499_v6 }
 0x107   :  { %388 = vmatpush3.msra.mxu1 %v245_v18 }
 0x108   :  { %389 = vmatprep.subr.mxu1 %v499_v6 }
 0x109   :  { %390 = vmatpush3.msra.mxu1 %v244_v19 }
 0x1c2   :  { %v233_v23 = vpop.f32.mrf.mxu1 }
 0x1c3   :  { %v243_v24 = vmul.f32 %v407_v22, %v233_v23 }
 0x1c4   :  { %v382_v25 = vpop.f32.mrf.mxu1 }
 0x1c5   :  { %392 = vmatmul.mubr.msk.f32.vlgmr.msra.gmra.mxu1 %vm78_vm0, %v243_v24 }
 0x285   :  { %v324_v27 = vpop.f32.mrf.mxu1 }
 0x286   :  { %v325_v28 = vadd.f32 %v349_v26, %v324_v27 }
 0x287   :  { %v393_v29 = vpop.f32.mrf.mxu1 }
 0x288   :  { %328 = vst [vmem:[#allocation8] sm:$0x3] %v325_v28 }
 0x289   :  { %479 = shalt.err (!%p476_p5)
}
 0x28a   :  { %338 = dma.vmem_to_hbm [thread:$0]  %s336_s16, 32, %s569_s6, [#allocation4]  }
 0x28b   :  { %492 = dma.done.wait [#allocation4], 32  }
 0x28c   :  { %493 = vsyncadd [#allocation4], 4294967264 }
 0x28d   :  { %342 = vsyncpa [#allocation3], 1 }
 0x28e   :  { %343 = vsyncpa [#allocation6], 1 }
 0x28f   :  { %344 = vsyncpa [#allocation4], 1 }

</bundles_post_ra>
